<compile_context>
chip_gen: v5e
topology: v5e:2x2
jax: 0.10.0
libtpu: 0.0.40
codegen_flags: <defaults>
</compile_context>

<pallas_src>
import functools
import math

import jax
import jax.numpy as jnp
from jax.experimental import pallas as pl
from jax.experimental.pallas import tpu as pltpu


def _round_up(a, b):
    return (a + b - 1) // b * b


def _largest_divisor_tile(dim, max_tile, granule):
    """Largest multiple of `granule` that is <= max_tile and divides `dim`."""
    t = (min(max_tile, dim) // granule) * granule
    while t >= granule:
        if dim % t == 0:
            return t
        t -= granule
    return None


def _epilogue(acc, bias, out_scale, bias_scale, activation):
    out = acc * out_scale + bias * bias_scale
    if activation:
        # leaky_relu(0.2); the sqrt(2) gain is already folded into the scales.
        out = jnp.maximum(out, 0.2 * out)
    return out


def _equal_linear_kernel_fullk(x_ref, w_ref, b_ref, o_ref, *,
                               out_scale, bias_scale, activation):
    # x: (tm, K), w: (tn, K) -> contract K of both (x @ W.T), f32 accumulation.
    acc = jax.lax.dot_general(
        x_ref[...], w_ref[...],
        dimension_numbers=(((1,), (1,)), ((), ())),
        preferred_element_type=jnp.float32)
    o_ref[...] = _epilogue(acc, b_ref[...], out_scale, bias_scale,
                           activation).astype(o_ref.dtype)


def _equal_linear_kernel_ktiled(x_ref, w_ref, b_ref, o_ref, *,
                                out_scale, bias_scale, activation):
    # The f32 output block is resident across the K grid axis (its index_map
    # ignores k), so accumulate into it directly -- no scratch accumulator.
    k = pl.program_id(2)

    @pl.when(k == 0)
    def _():
        o_ref[...] = jnp.zeros_like(o_ref)

    o_ref[...] += jax.lax.dot_general(
        x_ref[...], w_ref[...],
        dimension_numbers=(((1,), (1,)), ((), ())),
        preferred_element_type=jnp.float32)

    @pl.when(k == pl.num_programs(2) - 1)
    def _():
        o_ref[...] = _epilogue(o_ref[...], b_ref[...], out_scale, bias_scale,
                               activation)


def equal_linear(x, weight, bias=None, *, lr_mul=1.0, activation=None,
                 tm=512, tn=512, tk=None, allow_xla_fallback=True):
    """Pallas implementation of EqualLinear.forward.

    x:      (batch, in_dim)   float32
    weight: (out_dim, in_dim) float32 (native PyTorch Linear layout, NOT transposed)
    bias:   (out_dim,)        float32 or None
    """
    batch, in_dim = x.shape
    out_dim, in_dim_w = weight.shape
    assert in_dim == in_dim_w, "weight / input dim mismatch"
    if bias is None:
        bias = jnp.zeros((out_dim,), dtype=x.dtype)

    scale = lr_mul / math.sqrt(in_dim)
    if activation:
        out_scale, bias_scale = scale * math.sqrt(2.0), lr_mul * math.sqrt(2.0)
    else:
        out_scale, bias_scale = scale, lr_mul

    # Tiny shapes: pallas_call / lane-padding overhead dominates; let XLA fuse.
    if allow_xla_fallback and batch <= 8 and out_dim <= 128:
        acc = jax.lax.dot_general(x, weight, (((1,), (1,)), ((), ())),
                                  preferred_element_type=jnp.float32)
        return _epilogue(acc, bias, out_scale, bias_scale,
                         activation).astype(x.dtype)

    # ---- tile selection: exact divisors or full dims (no weight padding) ----
    # N tile: multiple of 128 dividing out_dim, else the whole out_dim.
    if out_dim <= tn:
        tn = out_dim
    else:
        tn = _largest_divisor_tile(out_dim, tn, 128) or out_dim

    # M tile: multiple of 8 dividing batch, else pad x rows (weight untouched).
    pad_m = 0
    if batch <= tm:
        tm = batch
    else:
        t = _largest_divisor_tile(batch, tm, 8)
        if t is not None:
            tm = t
        else:
            tm = max(8, tm // 8 * 8)
            pad_m = _round_up(batch, tm) - batch

    # K tile: full in_dim by default (collapses the reduction grid axis).
    if tk is None or tk >= in_dim:
        tk = in_dim
    else:
        tk = _largest_divisor_tile(in_dim, tk, 128) or in_dim

    itemsize = jnp.dtype(x.dtype).itemsize

    def vmem_bytes(tm_, tn_, tk_):
        # double-buffered x/w/bias blocks + (generously) triple-counted output.
        return 2 * (tm_ * tk_ + tn_ * tk_ + tn_) * itemsize + 3 * tm_ * tn_ * 4

    try:
        vmem_cap = int(getattr(pltpu.get_tpu_info(), "vmem_capacity_bytes",
                               64 * 1024 * 1024))
    except Exception:
        vmem_cap = 64 * 1024 * 1024

    # Keep the working set well under capacity (headroom for compiler scratch).
    budget = int(0.35 * vmem_cap)
    while vmem_bytes(tm, tn, tk) > budget:
        if tk > 128 and jnp.dtype(x.dtype) == jnp.float32:
            new_tk = _largest_divisor_tile(in_dim, tk // 2, 128)
            if new_tk is not None and new_tk < tk:
                tk = new_tk
                continue
        if tm > 8 and tm % 16 == 0:
            tm //= 2
            continue
        if tn > 128 and tn % 256 == 0:
            tn //= 2
            continue
        break

    m_p = batch + pad_m
    grid_m, grid_n = m_p // tm, out_dim // tn

    # v7x has 2 TensorCores: make sure the parallel (M, N) grid has >= 2 tiles.
    if grid_m * grid_n < 2:
        if tn % 256 == 0:
            tn //= 2
        elif tm % 16 == 0:
            tm //= 2
        grid_m, grid_n = m_p // tm, out_dim // tn

    k_steps = in_dim // tk

    x_p = x if pad_m == 0 else jnp.pad(x, ((0, pad_m), (0, 0)))
    bias2d = bias.reshape(1, out_dim)

    vmem_limit = min(max(2 * vmem_bytes(tm, tn, tk), 32 * 1024 * 1024),
                     int(0.8 * vmem_cap))

    common = dict(out_scale=out_scale, bias_scale=bias_scale,
                  activation=bool(activation))

    if k_steps == 1:
        kernel = functools.partial(_equal_linear_kernel_fullk, **common)
        grid = (grid_m, grid_n)
        in_specs = [
            pl.BlockSpec((tm, in_dim), lambda i, j: (i, 0)),   # x rows, full K
            pl.BlockSpec((tn, in_dim), lambda i, j: (j, 0)),   # W rows, full K
            pl.BlockSpec((1, tn), lambda i, j: (0, j)),        # bias
        ]
        out_specs = pl.BlockSpec((tm, tn), lambda i, j: (i, j))
        dims = ("parallel", "parallel")
    else:
        # TODO(synk): for sub-32-bit output dtypes this path would need an f32
        # VMEM scratch accumulator; all EqualLinear uses in the module are f32.
        assert jnp.dtype(x.dtype) == jnp.float32
        kernel = functools.partial(_equal_linear_kernel_ktiled, **common)
        grid = (grid_m, grid_n, k_steps)
        in_specs = [
            pl.BlockSpec((tm, tk), lambda i, j, k: (i, k)),
            pl.BlockSpec((tn, tk), lambda i, j, k: (j, k)),
            pl.BlockSpec((1, tn), lambda i, j, k: (0, j)),
        ]
        out_specs = pl.BlockSpec((tm, tn), lambda i, j, k: (i, j))
        dims = ("parallel", "parallel", "arbitrary")

    out_p = pl.pallas_call(
        kernel,
        out_shape=jax.ShapeDtypeStruct((m_p, out_dim), x.dtype),
        grid_spec=pltpu.PrefetchScalarGridSpec(
            num_scalar_prefetch=0,
            grid=grid,
            in_specs=in_specs,
            out_specs=out_specs,
        ),
        compiler_params=pltpu.CompilerParams(
            dimension_semantics=dims,
            vmem_limit_bytes=vmem_limit,
        ),
    )(x_p, weight, bias2d)

    return out_p if pad_m == 0 else out_p[:batch]


def _reference(x, weight, bias, *, lr_mul=1.0, activation=None):
    scale = lr_mul / math.sqrt(x.shape[1])
    out = jnp.dot(x, (weight * scale).T, precision=jax.lax.Precision.HIGHEST)
    out = out + bias * lr_mul
    if activation:
        out = jnp.where(out >= 0, out, 0.2 * out) * math.sqrt(2.0)
    return out


def _check(name, got, ref, atol=3e-2, rtol=3e-2):
    assert got.shape == ref.shape, f"{name}: shape {got.shape} vs {ref.shape}"
    assert jnp.allclose(got, ref, atol=atol, rtol=rtol), f"{name}: mismatch"


if __name__ == "__main__":
    key = jax.random.PRNGKey(0)

    # ---- Case 0: tiny-shape XLA fallback heuristic ----
    k_x, k_w, key = jax.random.split(key, 3)
    x0 = jax.random.normal(k_x, (4, 32), dtype=jnp.float32)
    w0 = jax.random.normal(k_w, (64, 32), dtype=jnp.float32)
    b0 = jnp.full((64,), 0.2, dtype=jnp.float32)
    out0 = jax.block_until_ready(equal_linear(x0, w0, b0, activation="fused_lrelu"))
    _check("fallback", out0, _reference(x0, w0, b0, activation="fused_lrelu"))

    # ---- Case 1: small shapes, Pallas full-K path (linear + fused_lrelu) ----
    k_x, k_w, key = jax.random.split(key, 3)
    lr_mul = 0.5
    x1 = jax.random.normal(k_x, (8, 32), dtype=jnp.float32)
    w1 = jax.random.normal(k_w, (16, 32), dtype=jnp.float32) / lr_mul
    b1 = jnp.full((16,), 0.3, dtype=jnp.float32)
    out1a = jax.block_until_ready(
        equal_linear(x1, w1, b1, lr_mul=lr_mul, activation=None,
                     allow_xla_fallback=False))
    out1b = jax.block_until_ready(
        equal_linear(x1, w1, b1, lr_mul=lr_mul, activation="fused_lrelu",
                     allow_xla_fallback=False))
    _check("tiny linear", out1a, _reference(x1, w1, b1, lr_mul=lr_mul))
    _check("tiny fused", out1b,
           _reference(x1, w1, b1, lr_mul=lr_mul, activation="fused_lrelu"))

    # ---- Case 2: K-tiled (M,N,K) grid path, accumulating into o_ref ----
    k_x, k_w, key = jax.random.split(key, 3)
    x2 = jax.random.normal(k_x, (192, 384), dtype=jnp.float32)
    w2 = jax.random.normal(k_w, (256, 384), dtype=jnp.float32)
    b2 = jnp.full((256,), 0.1, dtype=jnp.float32)
    out2 = jax.block_until_ready(
        equal_linear(x2, w2, b2, activation="fused_lrelu",
                     tm=64, tn=128, tk=128))            # grid = (3, 2, 3)
    _check("ktiled fused", out2, _reference(x2, w2, b2, activation="fused_lrelu"))

    # ---- Case 3: non-divisible batch -> padded M, full-dim (non-128) N block ----
    k_x, k_w, key = jax.random.split(key, 3)
    x3 = jax.random.normal(k_x, (100, 160), dtype=jnp.float32)
    w3 = jax.random.normal(k_w, (192, 160), dtype=jnp.float32)
    b3 = jnp.full((192,), -0.05, dtype=jnp.float32)
    out3 = jax.block_until_ready(equal_linear(x3, w3, b3, activation=None, tm=64))
    _check("padded-M linear", out3, _reference(x3, w3, b3))

    # ---- Case 4: small batch / big N -> N split so both v7x cores get a tile ----
    k_x, k_w, key = jax.random.split(key, 3)
    x4 = jax.random.normal(k_x, (8, 512), dtype=jnp.float32)
    w4 = jax.random.normal(k_w, (512, 512), dtype=jnp.float32)
    b4 = jnp.zeros((512,), dtype=jnp.float32)
    out4 = jax.block_until_ready(equal_linear(x4, w4, b4, activation="fused_lrelu"))
    _check("split-N fused", out4, _reference(x4, w4, b4, activation="fused_lrelu"))

    print("KERNEL_OK")
</pallas_src>

<mosaic_0001>
module attributes {stable_mosaic.version = 11 : i64} {
  func.func @_equal_linear_kernel_fullk(%arg0: i32, %arg1: i32, %arg2: memref<8x32xf32, #tpu.memory_space<vmem>>, %arg3: memref<16x32xf32, #tpu.memory_space<vmem>>, %arg4: memref<1x16xf32, #tpu.memory_space<vmem>>, %arg5: memref<8x16xf32, #tpu.memory_space<vmem>>) attributes {dimension_semantics = [#tpu.dimension_semantics<parallel>, #tpu.dimension_semantics<parallel>], iteration_bounds = array<i64: 1, 1>, scalar_prefetch = 0 : i64, scratch_operands = 0 : i64, tpu.core_type = #tpu.core_type<tc>, window_params = [{transform_indices = @transform_0, window_bounds = array<i64: 8, 32>}, {transform_indices = @transform_1, window_bounds = array<i64: 16, 32>}, {transform_indices = @transform_2, window_bounds = array<i64: 1, 16>}, {transform_indices = @transform_3, window_bounds = array<i64: 8, 16>}]} {
    %c0 = arith.constant 0 : index
    %c0_0 = arith.constant 0 : index
    %0 = vector.load %arg2[%c0, %c0_0] : memref<8x32xf32, #tpu.memory_space<vmem>>, vector<8x32xf32>
    %c0_1 = arith.constant 0 : index
    %c0_2 = arith.constant 0 : index
    %1 = vector.load %arg3[%c0_1, %c0_2] : memref<16x32xf32, #tpu.memory_space<vmem>>, vector<16x32xf32>
    %cst = arith.constant dense<0.000000e+00> : vector<8x16xf32>
    %2 = tpu.matmul %0, %1, %cst {dimension_numbers = #tpu.dot_dimension_numbers<[1], [1], [0], [0], [0, 0, 1, 0], [], []>} : vector<8x32xf32>, vector<16x32xf32>, vector<8x16xf32> -> vector<8x16xf32>
    %c0_3 = arith.constant 0 : index
    %c0_4 = arith.constant 0 : index
    %3 = vector.load %arg4[%c0_3, %c0_4] : memref<1x16xf32, #tpu.memory_space<vmem>>, vector<1x16xf32>
    %cst_5 = arith.constant 0.0883883461 : f32
    %4 = vector.broadcast %cst_5 : f32 to vector<8x16xf32>
    %5 = arith.mulf %2, %4 : vector<8x16xf32>
    %cst_6 = arith.constant 5.000000e-01 : f32
    %6 = vector.broadcast %cst_6 : f32 to vector<1x16xf32>
    %7 = arith.mulf %3, %6 : vector<1x16xf32>
    %8 = vector.broadcast %7 : vector<1x16xf32> to vector<8x16xf32>
    %9 = arith.addf %5, %8 : vector<8x16xf32>
    %c0_7 = arith.constant 0 : index
    %c0_8 = arith.constant 0 : index
    %10 = vector.load %arg5[%c0_7, %c0_8] : memref<8x16xf32, #tpu.memory_space<vmem>>, vector<8x16xf32>
    tpu.vector_store %arg5[%c0_7, %c0_8], %9 {strides = array<i32>} : memref<8x16xf32, #tpu.memory_space<vmem>>, vector<8x16xf32>,
    return
  }
  func.func @transform_0(%arg0: i32, %arg1: i32) -> (i32, i32) {
    %c0_i32 = arith.constant 0 : i32
    %c0_i32_0 = arith.constant 0 : i32
    return %arg0, %c0_i32 : i32, i32
  }
  func.func @transform_1(%arg0: i32, %arg1: i32) -> (i32, i32) {
    %c0_i32 = arith.constant 0 : i32
    %c0_i32_0 = arith.constant 0 : i32
    return %arg1, %c0_i32 : i32, i32
  }
  func.func @transform_2(%arg0: i32, %arg1: i32) -> (i32, i32) {
    %c0_i32 = arith.constant 0 : i32
    %c0_i32_0 = arith.constant 0 : i32
    return %c0_i32, %arg1 : i32, i32
  }
  func.func @transform_3(%arg0: i32, %arg1: i32) -> (i32, i32) {
    %c0_i32 = arith.constant 0 : i32
    return %arg0, %arg1 : i32, i32
  }
}

</mosaic_0001>

<bundles_post_ra>
// kernel: tpu_custom_call.1
= control target key start
LH: loop header
LB: loop body
LE: loop exit
PB: predicated region body
PF: predicated region fallthrough
CT: control target
= control target key end

     0   :  { %8 = vsyncpa [#allocation3], 0  ;;  %s228_s0 = inlined_call_operand.hbm [shape: f32[8,32], index: 0, kind: input, shape index: {}]   ;;  %s229_s1 = inlined_call_operand.hbm [shape: f32[16,32], index: 1, kind: input, shape index: {}]   ;;  %s230_s2 = inlined_call_operand.vmem [shape: f32[1,16], index: 2, kind: input, shape index: {}]   ;;  %s231_s3 = inlined_call_operand.hbm [shape: f32[8,16], index: 3, kind: output, shape index: {}]  }
   0x1   :  { %9 = vsyncpa [#allocation6], 0 }
   0x2   :  { %10 = vsyncpa [#allocation4], 0  ;;  %s16_s14 = sshll.u32 %s228_s0, 4  ;;  %s191_s15 = smov [#allocation2]   ;;  %s17_s14 = int_to_ptr.hbm [resolvable:$true] %s16_s14 }
   0x3   :  { %s18_s16 = sshll.u32 %s191_s15, 4  ;;  %s26_s19 = sshll.u32 %s229_s1, 4  ;;  %s19_s16 = int_to_ptr.vmem [resolvable:$true] %s18_s16  ;;  %s27_s19 = int_to_ptr.hbm [resolvable:$true] %s26_s19 }
   0x4   :  { %21 = dma.hbm_to_vmem [thread:$0]  %s17_s14, 128, %s19_s16, [#allocation3]  }
   0x5   :  { %s192_s20 = smov [#allocation5]   ;;  %s193_s22 = smov 128  }
   0x6   :  { %s28_s21 = sshll.u32 %s192_s20, 4  ;;  %s194_s23 = smov 8   ;;  %s29_s21 = int_to_ptr.vmem [resolvable:$true] %s28_s21 }
   0x7   :  { %34 = dma.hbm_to_vmem [thread:$0]  %s27_s19, 256, %s29_s21, [#allocation6], %s193_s22, %s193_s22, %s194_s23  }
   0x8   :  { %185 = dma.done.wait [#allocation3], 128  }
   0x9   :  { %186 = vsyncadd [#allocation3], 4294967168 }
   0xa   :  { %187 = dma.done.wait [#allocation6], 256  }
   0xb   :  { %188 = vsyncadd [#allocation6], 4294967040  ;;  %vm48_vm0 = vcmask 261120   ;;  %v47_v0 = vld [vmem:[#allocation5 + $0x8] sm:$0xff]  ;;  %v46_v1 = vld [vmem:[#allocation5] sm:$0xff]  ;;  %s195_s24 = smov [#allocation7]  }
   0xc   :  { %105 = vmatpush.xpose.msk.msra.mxu0 %vm48_vm0, %v47_v0  ;;  %v45_v2 = vld [vmem:[#allocation2] sm:$0xff]  ;;  %s92_s25 = sshll.u32 %s195_s24, 4  ;;  %s94_s28 = sshll.u32 %s231_s3, 4  ;;  %vm85_vm1 = vcmask 130048   ;;  %s93_s25 = int_to_ptr.vmem [resolvable:$true] %s92_s25  ;;  %s95_s28 = int_to_ptr.hbm [resolvable:$true] %s94_s28 }
   0xd   :  { %v78_v3 = vld [vmem:[%s230_s2] sm:$0x1] }
   0xe   :  { %v80_v4 = vmul.f32 0.5, %v78_v3 }
  0x10   :  { %106 = vmatpush.xpose.msk.msra.mxu0 %vm48_vm0, %v46_v1  ;;  %v82_v5 = vperm.slane %v80_v4, 0 }
  0x13   :  { %107 = vmatmul.msk.f32.vlgmr.msra.gmra.mxu0 %vm48_vm0, %v45_v2 }
  0x90   :  { %v75_v6 = vpop.f32.mrf.mxu0 }
  0x91   :  { %v79_v7 = vmul.f32 0.088388346, %v75_v6 }
  0x93   :  { %v84_v8 = vadd.f32 %v82_v5, %v79_v7 }
  0x95   :  { %86 = vst.msk [vmem:[#allocation7] sm:$0xff] %vm85_vm1, %v84_v8 }
  0x96   :  { %97 = dma.vmem_to_hbm [thread:$0]  %s93_s25, 128, %s95_s28, [#allocation4]  }
  0x97   :  { %189 = dma.done.wait [#allocation4], 128  }
  0x98   :  { %190 = vsyncadd [#allocation4], 4294967168 }
  0x99   :  { %102 = vsyncpa [#allocation3], 1 }
  0x9a   :  { %103 = vsyncpa [#allocation6], 1 }
  0x9b   :  { %104 = vsyncpa [#allocation4], 1 }

</bundles_post_ra>
